<compile_context>
chip_gen: v7x
topology: tpu7x:2x2x1
jax: 0.10.0
libtpu: 0.0.40
codegen_flags: <defaults>
</compile_context>

<pallas_src>
import math

import jax
import jax.numpy as jnp
from jax.experimental import pallas as pl
from jax.experimental.pallas import tpu as pltpu


def _copy_kernel(x_ref, o_ref):
    # Pure copy of the current VMEM tile (works for any block rank).
    o_ref[...] = x_ref[...]


# Lane widths to try (largest first) -> unmasked, lane-dense full-width stores.
_LANE_CANDIDATES = (16384, 8192, 4096, 2048, 1024, 512, 256, 128)

# ~6 MiB per tile. With the default double-buffering on both input and output the
# resident VMEM is ~4x tile ~= 24 MiB: comfortable on v7x's 64 MiB physical VMEM and
# trivially fine on v5e/v6e's 128 MiB.
_TILE_BUDGET_BYTES = 6 * 1024 * 1024
# Largest odd-sized array moved as a single full-extent block (kept small because a
# (1, N) block pads to 8 sublanes in VMEM, i.e. ~8x the raw bytes).
_FULL_BLOCK_MAX_BYTES = 512 * 1024


def _is_v7x() -> bool:
    """Best-effort detection of a 2-TensorCore (v7x) chip; defaults to False."""
    try:
        return "v7" in jax.devices()[0].device_kind.lower()
    except Exception:  # pragma: no cover - defensive only
        return False


def _vmem_limit_bytes(resident_tile_bytes: int) -> int:
    # in + out, double-buffered => ~4x tile resident, plus slack for Mosaic scratch.
    return max(8 << 20, min(4 * resident_tile_bytes + (4 << 20), 32 << 20))


def _cost(total_bytes: int) -> pl.CostEstimate:
    # Pure memcpy: zero flops, HBM read + write of every byte.
    return pl.CostEstimate(flops=0, transcendentals=0, bytes_accessed=2 * total_bytes)


def _choose_row_tile(rows: int, lane: int, itemsize: int) -> int:
    """Sublane tile: multiple of the dtype packing granule, within the VMEM budget."""
    sub = max(8, 32 // itemsize)  # f32 -> 8, bf16 -> 16, int8/fp8 -> 32 sublane granule
    tm = (_TILE_BUDGET_BYTES // (lane * itemsize)) // sub * sub
    tm = max(sub, tm)
    if tm < rows:
        return tm  # already >= 2 grid steps (partial tail block is masked)
    # Whole array fits in one tile. Only split on 2-TensorCore chips (v7x); on
    # v5e/v6e the grid is a serial loop, so splitting is pure overhead.
    if _is_v7x() and rows >= 2 * sub:
        half = pl.cdiv(rows, 2)
        return min(rows, pl.cdiv(half, sub) * sub)
    return rows


def identity_copy(x: jnp.ndarray) -> jnp.ndarray:
    """Materialized identity: bit-exact copy of x into a new buffer (Pallas memcpy)."""
    orig_shape = x.shape
    total = math.prod(orig_shape) if orig_shape else 1
    if total == 0:
        return x  # nothing to copy
    itemsize = jnp.dtype(x.dtype).itemsize
    total_bytes = total * itemsize

    lane = next((c for c in _LANE_CANDIDATES if total % c == 0), None)

    if lane is not None:
        # Lane-dense slab: contiguous reshape is free.
        rows = total // lane
        x2 = x.reshape(rows, lane)
        tm = _choose_row_tile(rows, lane, itemsize)
        tile_bytes = tm * lane * itemsize
        y2 = pl.pallas_call(
            _copy_kernel,
            out_shape=jax.ShapeDtypeStruct((rows, lane), x.dtype),
            grid_spec=pltpu.PrefetchScalarGridSpec(
                num_scalar_prefetch=0,
                grid=(pl.cdiv(rows, tm),),
                in_specs=[pl.BlockSpec((tm, lane), lambda i: (i, 0))],
                out_specs=pl.BlockSpec((tm, lane), lambda i: (i, 0)),
            ),
            compiler_params=pltpu.CompilerParams(
                # TODO(synk): on v7x, CORE_PARALLEL on this axis would shard the copy
                # across both TensorCores; kept "parallel" for portability.
                dimension_semantics=("parallel",),
                vmem_limit_bytes=_vmem_limit_bytes(tile_bytes),
            ),
            cost_estimate=_cost(total_bytes),
        )(x2)
        return y2.reshape(orig_shape)

    if total_bytes <= _FULL_BLOCK_MAX_BYTES:
        # Small, non-128-divisible input: single full-extent block (always legal).
        x2 = x.reshape(1, total)
        y2 = pl.pallas_call(
            _copy_kernel,
            out_shape=jax.ShapeDtypeStruct((1, total), x.dtype),
            compiler_params=pltpu.CompilerParams(
                vmem_limit_bytes=_vmem_limit_bytes(8 * total_bytes)),
            cost_estimate=_cost(total_bytes),
        )(x2)
        return y2.reshape(orig_shape)

    # Large, non-128-divisible input: lane-tiled (1, total) with a masked partial tail.
    # Tile is sized for the 8-sublane padding of a (1, N) VMEM block (8x raw bytes).
    x2 = x.reshape(1, total)
    tile_lane = max(128, (_TILE_BUDGET_BYTES // (8 * itemsize)) // 128 * 128)
    padded_tile_bytes = 8 * tile_lane * itemsize
    y2 = pl.pallas_call(
        _copy_kernel,
        out_shape=jax.ShapeDtypeStruct((1, total), x.dtype),
        grid_spec=pltpu.PrefetchScalarGridSpec(
            num_scalar_prefetch=0,
            grid=(pl.cdiv(total, tile_lane),),
            in_specs=[pl.BlockSpec((1, tile_lane), lambda i: (0, i))],
            out_specs=pl.BlockSpec((1, tile_lane), lambda i: (0, i)),
        ),
        compiler_params=pltpu.CompilerParams(
            dimension_semantics=("parallel",),
            vmem_limit_bytes=_vmem_limit_bytes(padded_tile_bytes),
        ),
        cost_estimate=_cost(total_bytes),
    )(x2)
    return y2.reshape(orig_shape)


def identity(x: jnp.ndarray, *, materialize: bool = False) -> jnp.ndarray:
    """Identity forward pass.

    The PyTorch module returns its input unchanged, so the fastest "kernel" is no
    kernel at all: by default we return x directly (zero HBM traffic).  Pass
    materialize=True to force a bit-exact copy into a new buffer via the Pallas
    memcpy kernel.
    """
    if not materialize:
        return x
    return identity_copy(x)


if __name__ == "__main__":
    key = jax.random.PRNGKey(0)

    # Identity(d=32) applied to a batch of 8 feature vectors (matches the module's use).
    N, D = 8, 32
    x = jax.random.normal(key, (N, D), dtype=jnp.float32)

    # Default path: identity is free (returns its input, exactly like the PyTorch module).
    y_fast = identity(x)
    assert y_fast.shape == x.shape and y_fast.dtype == x.dtype
    assert bool(jnp.all(y_fast == x))

    # Materialized path: Pallas memcpy kernel (lane-dense slab, single block).
    y = jax.block_until_ready(identity(x, materialize=True))
    assert y.shape == x.shape and y.dtype == x.dtype
    assert bool(jnp.all(y == x))

    # Multi-grid-step lane-dense path: (2048, 1024) f32 -> (128, 16384) slab,
    # 2 grid steps of (96, 16384) with a masked partial tail block.
    x2 = jax.random.normal(jax.random.PRNGKey(1), (2048, 1024), dtype=jnp.float32)
    y2 = jax.block_until_ready(identity_copy(x2))
    assert y2.shape == x2.shape and y2.dtype == x2.dtype
    assert bool(jnp.all(y2 == x2))

    # Packed dtype (bf16) through the sublane-granule guard.
    x3 = jax.random.normal(jax.random.PRNGKey(2), (8, 32), dtype=jnp.bfloat16)
    y3 = jax.block_until_ready(identity_copy(x3))
    assert y3.shape == x3.shape and y3.dtype == x3.dtype
    assert bool(jnp.all(y3 == x3))

    # Small non-128-divisible input: single full-extent block fallback.
    x4 = jax.random.normal(jax.random.PRNGKey(3), (7, 33), dtype=jnp.float32)
    y4 = jax.block_until_ready(identity_copy(x4))
    assert y4.shape == x4.shape and y4.dtype == x4.dtype
    assert bool(jnp.all(y4 == x4))

    # Larger non-128-divisible input: lane-tiled (1, total) path with masked tail.
    x5 = jax.random.normal(jax.random.PRNGKey(4), (200_003,), dtype=jnp.float32)
    y5 = jax.block_until_ready(identity_copy(x5))
    assert y5.shape == x5.shape and y5.dtype == x5.dtype
    assert bool(jnp.all(y5 == x5))

    print("KERNEL_OK")
</pallas_src>

<mosaic_0001>
module attributes {stable_mosaic.version = 11 : i64} {
  func.func @_copy_kernel(%arg0: i32, %arg1: memref<1x256xf32, #tpu.memory_space<vmem>>, %arg2: memref<1x256xf32, #tpu.memory_space<vmem>>) attributes {dimension_semantics = [#tpu.dimension_semantics<parallel>], iteration_bounds = array<i64: 1>, scalar_prefetch = 0 : i64, scratch_operands = 0 : i64, tpu.core_type = #tpu.core_type<tc>, window_params = [{transform_indices = @transform_0, window_bounds = array<i64: 1, 256>}, {transform_indices = @transform_1, window_bounds = array<i64: 1, 256>}]} {
    %c0 = arith.constant 0 : index
    %c0_0 = arith.constant 0 : index
    %0 = vector.load %arg1[%c0, %c0_0] : memref<1x256xf32, #tpu.memory_space<vmem>>, vector<1x256xf32>
    %c0_1 = arith.constant 0 : index
    %c0_2 = arith.constant 0 : index
    %1 = vector.load %arg2[%c0_1, %c0_2] : memref<1x256xf32, #tpu.memory_space<vmem>>, vector<1x256xf32>
    tpu.vector_store %arg2[%c0_1, %c0_2], %0 {strides = array<i32>} : memref<1x256xf32, #tpu.memory_space<vmem>>, vector<1x256xf32>,
    return
  }
  func.func @transform_0(%arg0: i32) -> (i32, i32) {
    %c0_i32 = arith.constant 0 : i32
    %c0_i32_0 = arith.constant 0 : i32
    return %arg0, %c0_i32 : i32, i32
  }
  func.func @transform_1(%arg0: i32) -> (i32, i32) {
    %c0_i32 = arith.constant 0 : i32
    %c0_i32_0 = arith.constant 0 : i32
    return %arg0, %c0_i32 : i32, i32
  }
}

</mosaic_0001>

<bundles_post_ra>
// kernel: tpu_custom_call.1
= control target key start
LH: loop header
LB: loop body
LE: loop exit
PB: predicated region body
PF: predicated region fallthrough
CT: control target
= control target key end

     0   :  { %6 = vsyncpa [#allocation3], 0  ;;  %s128_s0 = inlined_call_operand.hbm [shape: f32[1,256], index: 0, kind: input, shape index: {}]   ;;  %s129_s1 = inlined_call_operand.hbm [shape: f32[1,256], index: 1, kind: output, shape index: {}]  }
   0x1   :  { %7 = vsyncpa [#allocation4], 0  ;;  %s92_s6 = smov [#allocation2]   ;;  %s44_s10 = scalar_lea.hbm %s128_s0, 32 }
   0x2   :  { %s14_s7 = sshll.u32 %s92_s6, 4  ;;  %p45_p0 = scmp.ne.s32.totalorder %s128_s0, %s44_s10  ;;  %s15_s7 = int_to_ptr.vmem [resolvable:$true] %s14_s7 }
   0x3   :  { %p48_p1 = scmp.lt.u32.totalorder %s44_s10, %s128_s0 }
   0x5   :  { %p50_p2 = pnand %p48_p1, %p45_p0 }
   0x7   :  { %53 = shalt.err (!%p50_p2)
}
   0x8   :  { %s54_s15 = scalar_lea.vmem %s15_s7, 32  ;;  %p59_p4 = scmp.lt.s32.totalorder %s15_s7, %s15_s7 }
   0x9   :  { %p55_p3 = scmp.ne.s32.totalorder %s15_s7, %s54_s15  ;;  %p60_p5 = scmp.lt.s32.totalorder %s54_s15, %s54_s15 }
   0xb   :  { %p61_p6 = por %p60_p5, %p59_p4 }
   0xd   :  { %p62_p7 = pnand %p61_p6, %p55_p3 }
   0xf   :  { %65 = shalt.err (!%p62_p7)
}
  0x10   :  { %17 = dma.hbm_to_vmem [thread:$0]  %s128_s0, 32, %s15_s7, [#allocation3]  }
  0x11   :  { %88 = dma.done.wait [#allocation3], 32  }
  0x12   :  { %89 = vsyncadd [#allocation3], 4294967264  ;;  %v22_v0 = vlaneseq  ;;  %s93_s18 = smov [#allocation5]   ;;  %v21_v1 = vld [vmem:[#allocation2] sm:$0x3] }
  0x13   :  { %s33_s19 = sshll.u32 %s93_s18, 4  ;;  %s34_s19 = int_to_ptr.vmem [resolvable:$true] %s33_s19 }
  0x14   :  { %vm24_vm0 = vcmp.lt.s32.totalorder %v22_v0, 256  ;;  %s66_s20 = scalar_lea.vmem %s34_s19, 32  ;;  %p71_p9 = scmp.lt.s32.totalorder %s34_s19, %s34_s19 }
  0x15   :  { %26 = vst.msk [vmem:[#allocation5] sm:$0x3] %vm24_vm0, %v21_v1  ;;  %p67_p8 = scmp.ne.s32.totalorder %s34_s19, %s66_s20  ;;  %p72_p10 = scmp.lt.s32.totalorder %s66_s20, %s66_s20 }
  0x17   :  { %p73_p11 = por %p72_p10, %p71_p9 }
  0x19   :  { %p74_p12 = pnand %p73_p11, %p67_p8 }
  0x1b   :  { %77 = shalt.err (!%p74_p12)
}
  0x1c   :  { %s78_s0 = scalar_lea.hbm %s129_s1, 32 }
  0x1d   :  { %p79_p13 = scmp.ne.s32.totalorder %s129_s1, %s78_s0  ;;  %p82_p0 = scmp.lt.u32.totalorder %s78_s0, %s129_s1 }
  0x1f   :  { %p84_p1 = pnand %p82_p0, %p79_p13 }
  0x21   :  { %87 = shalt.err (!%p84_p1)
}
  0x22   :  { %36 = dma.vmem_to_hbm [thread:$0]  %s34_s19, 32, %s129_s1, [#allocation4]  }
  0x23   :  { %90 = dma.done.wait [#allocation4], 32  }
  0x24   :  { %91 = vsyncadd [#allocation4], 4294967264 }
  0x25   :  { %40 = vsyncpa [#allocation3], 1 }
  0x26   :  { %41 = vsyncpa [#allocation4], 1 }

</bundles_post_ra>
